<compile_context>
chip_gen: v7x
topology: tpu7x:2x2x1
jax: 0.10.0
libtpu: 0.0.40
codegen_flags: <defaults>
</compile_context>

<pallas_src>
import jax
import jax.numpy as jnp
from jax.experimental import pallas as pl
from jax.experimental.pallas import tpu as pltpu

LATENT_DIM = 15
HIDDEN_DIMS = [26, 32, 40]
INPUT_DIMS = [6, 5, 7]                    # synthetic X_bin / X_ord / X_cont feature counts
BATCH = 8

_IN_TOTAL = sum(INPUT_DIMS)                              # 18
_HID_TOTAL = sum(HIDDEN_DIMS)                            # 98
_ENC_OUT = 2 * LATENT_DIM * len(INPUT_DIMS)              # 90 (mu|logvar per subnet)
_SLAB = 128                                              # lane-dense slab width
_NUM_W = 7                                               # packed weight matrices in w_slab
MU_OFF = (len(INPUT_DIMS) - 1) * 2 * LATENT_DIM          # 60: last encoder's mu lanes
LV_OFF = MU_OFF + LATENT_DIM                             # 75: last encoder's logvar lanes
XHAT_OFF = _ENC_OUT                                      # 90: packed x_hat lanes


def _vmem_spec():
    return pl.BlockSpec(memory_space=pltpu.MemorySpace.VMEM)


# ------------------------------ fused kernel --------------------------------

def vae_fused_kernel(in_ref, w_ref, b_ref, out_ref):
    """in_ref:(B,128) [x | eps@75:90], w_ref:(896,128) stacked weights, b_ref:(8,128) biases."""
    f32 = jnp.float32

    def dot_w(a, k):        # static row slice of the weight slab: zero-cost view
        return jnp.dot(a, w_ref[k * _SLAB:(k + 1) * _SLAB, :], preferred_element_type=f32)

    def bias(k):            # one sublane row of the bias vreg, broadcast over batch
        return b_ref[k:k + 1, :]

    x = in_ref[...]                                              # (B,128)

    # --- packed encoders: 4 block-diagonal linears, Tanh after the first three ---
    h = jnp.tanh(dot_w(x, 0) + bias(0))                          # (B,128), live lanes 0:98
    h = jnp.tanh(dot_w(h, 1) + bias(1))
    h = jnp.tanh(dot_w(h, 2) + bias(2))
    enc = dot_w(h, 3) + bias(3)                                  # (B,128): enc outs in 0:90, zeros after

    # --- reparameterization folded into ONE decoder-L1 matmul ---
    # z_slab holds mu_last at lanes 60:75 (taken straight from enc) and eps*std_last at
    # lanes 75:90 (eps sits in in_ref at those lanes). wd1_combined has the decoder L1
    # weight at BOTH row offsets, so z_slab @ wd1_combined == z @ Wd1 exactly.
    lane = jax.lax.broadcasted_iota(jnp.int32, (1, _SLAB), 1)
    lv_mask = (lane >= LV_OFF) & (lane < LV_OFF + LATENT_DIM)
    z_slab = jnp.where(lv_mask, x * jnp.exp(0.5 * enc), enc)     # exp on EUP slot; junk lanes discarded

    # --- packed decoders ---
    g = jnp.tanh(dot_w(z_slab, 4) + bias(4))                     # (B,128), live lanes 0:98
    g = jnp.tanh(dot_w(g, 5) + bias(5))
    xhat = dot_w(g, 6) + bias(6)                                 # (B,128): x_hats in 90:108, zeros elsewhere

    # --- single unmasked lane-dense store ---
    out_ref[...] = enc + xhat


def _fused_call(in_slab, w_slab, b_slab):
    n = in_slab.shape[0]
    return pl.pallas_call(
        vae_fused_kernel,
        out_shape=jax.ShapeDtypeStruct((n, _SLAB), jnp.float32),
        in_specs=[_vmem_spec(), _vmem_spec(), _vmem_spec()],
        out_specs=_vmem_spec(),
    )(in_slab, w_slab, b_slab)


@jax.jit
def vae_forward_slab(in_slab, w_slab, b_slab):
    """Hot path: (B,128) slab in, (B,128) slab out — single XLA op (the Pallas call)."""
    return _fused_call(in_slab, w_slab, b_slab)


# ------------------------------ parameter init ------------------------------

def linear_params(key, in_dim, out_dim):
    """PyTorch-style nn.Linear init: U(-1/sqrt(in), 1/sqrt(in)).
    Weight stored pre-transposed as (in_dim, out_dim) so the kernel does x @ W + b."""
    kw, kb = jax.random.split(key)
    bound = 1.0 / jnp.sqrt(jnp.float32(in_dim))
    w = jax.random.uniform(kw, (in_dim, out_dim), jnp.float32, -bound, bound)
    b = jax.random.uniform(kb, (1, out_dim), jnp.float32, -bound, bound)
    return w, b


def make_vae_params(key):
    enc_params, dec_params = [], []
    for i, (in_d, h) in enumerate(zip(INPUT_DIMS, HIDDEN_DIMS)):
        k = jax.random.fold_in(key, i)
        ks = jax.random.split(k, 7)
        enc_params.append([
            linear_params(ks[0], in_d, h),
            linear_params(ks[1], h, h),
            linear_params(ks[2], h, h),
            linear_params(ks[3], h, 2 * LATENT_DIM),
        ])
        dec_params.append([
            linear_params(ks[4], LATENT_DIM, h),
            linear_params(ks[5], h, h),
            linear_params(ks[6], h, in_d),
        ])
    return enc_params, dec_params


def _block_diag(mats):
    rows = sum(m.shape[0] for m in mats)
    cols = sum(m.shape[1] for m in mats)
    out = jnp.zeros((rows, cols), jnp.float32)
    r = c = 0
    for m in mats:
        out = out.at[r:r + m.shape[0], c:c + m.shape[1]].set(m)
        r += m.shape[0]
        c += m.shape[1]
    return out


def _pad128(m, r0=0, c0=0):
    """Zero-pad a small matrix into a (128,128) tile with its top-left at (r0, c0)."""
    out = jnp.zeros((_SLAB, _SLAB), jnp.float32)
    return out.at[r0:r0 + m.shape[0], c0:c0 + m.shape[1]].set(m)


def _padrow(b, c0=0):
    out = jnp.zeros((1, _SLAB), jnp.float32)
    return out.at[:, c0:c0 + b.shape[1]].set(b)


def pack_vae_params(enc_params, dec_params):
    """Pack all weights into one (896,128) slab and all biases into one (8,128) slab (offline)."""
    bcat = lambda ps, l: jnp.concatenate([p[l][1] for p in ps], axis=1)

    # encoders: block-diagonal over concatenated features/hiddens, padded to (128,128)
    we1 = _pad128(_block_diag([p[0][0] for p in enc_params]))            # rows 0:18   cols 0:98
    we2 = _pad128(_block_diag([p[1][0] for p in enc_params]))            # rows 0:98   cols 0:98
    we3 = _pad128(_block_diag([p[2][0] for p in enc_params]))
    we4 = _pad128(_block_diag([p[3][0] for p in enc_params]))            # rows 0:98   cols 0:90

    # decoders: all consume the same z -> first-layer weights concatenate along lanes.
    # Bake "extract mu_last / logvar_last from the 128-wide slab" AND the merged
    # mu + eps*std contraction into ONE weight: place Wd1 at BOTH row offsets.
    wd1_raw = jnp.concatenate([p[0][0] for p in dec_params], axis=1)     # (15, 98)
    wd1 = (jnp.zeros((_SLAB, _SLAB), jnp.float32)
           .at[MU_OFF:MU_OFF + LATENT_DIM, :_HID_TOTAL].set(wd1_raw)
           .at[LV_OFF:LV_OFF + LATENT_DIM, :_HID_TOTAL].set(wd1_raw))
    wd2 = _pad128(_block_diag([p[1][0] for p in dec_params]))
    wd3 = _pad128(_block_diag([p[2][0] for p in dec_params]), c0=XHAT_OFF)   # cols 90:108

    w_slab = jnp.concatenate([we1, we2, we3, we4, wd1, wd2, wd3], axis=0)    # (896, 128)

    b_slab = jnp.concatenate([
        _padrow(bcat(enc_params, 0)),
        _padrow(bcat(enc_params, 1)),
        _padrow(bcat(enc_params, 2)),
        _padrow(bcat(enc_params, 3)),
        _padrow(bcat(dec_params, 0)),
        _padrow(bcat(dec_params, 1)),
        _padrow(bcat(dec_params, 2), c0=XHAT_OFF),
        jnp.zeros((1, _SLAB), jnp.float32),
    ], axis=0)                                                               # (8, 128)

    return w_slab, b_slab


# ---------------------- input packing / output unpacking ---------------------

def pack_inputs(xs, eps):
    """One-time host-side packing: x features at lanes 0:18, eps at the logvar_last lanes."""
    n = xs[0].shape[0]
    x_packed = jnp.concatenate(xs, axis=1)                                   # (B, 18)
    in_slab = jnp.zeros((n, _SLAB), jnp.float32)
    in_slab = in_slab.at[:, :_IN_TOTAL].set(x_packed)
    in_slab = in_slab.at[:, LV_OFF:LV_OFF + LATENT_DIM].set(eps)
    return in_slab


def unpack_outputs(slab):
    two_l = 2 * LATENT_DIM
    mus = [slab[:, i * two_l: i * two_l + LATENT_DIM] for i in range(len(INPUT_DIMS))]
    logvars = [slab[:, i * two_l + LATENT_DIM: (i + 1) * two_l] for i in range(len(INPUT_DIMS))]
    x_hats, off = [], XHAT_OFF
    for d in INPUT_DIMS:
        x_hats.append(slab[:, off: off + d])
        off += d
    return x_hats, mus, logvars


# ---------------------- pure-JAX reference (unpacked) ------------------------

def reference_forward(xs, eps, enc_params, dec_params):
    hp = jax.lax.Precision.HIGHEST
    mm = lambda a, b: jnp.dot(a, b, precision=hp)
    mus, logvars = [], []
    for x, layers in zip(xs, enc_params):
        h = x
        for w, b in layers[:-1]:
            h = jnp.tanh(mm(h, w) + b)
        w, b = layers[-1]
        out = mm(h, w) + b
        mus.append(out[:, :LATENT_DIM])
        logvars.append(out[:, LATENT_DIM:])
    z = mus[-1] + eps * jnp.exp(0.5 * logvars[-1])
    x_hats = []
    for layers in dec_params:
        h = z
        for w, b in layers[:-1]:
            h = jnp.tanh(mm(h, w) + b)
        w, b = layers[-1]
        x_hats.append(mm(h, w) + b)
    return x_hats, mus, logvars


# ----------------------------------- main ------------------------------------

if __name__ == "__main__":
    root = jax.random.PRNGKey(0)
    k_params, k_data, k_eps = jax.random.split(root, 3)

    enc_params, dec_params = make_vae_params(k_params)
    w_slab, b_slab = pack_vae_params(enc_params, dec_params)        # offline, once

    data_keys = jax.random.split(k_data, len(INPUT_DIMS))
    xs = [jax.random.normal(dk, (BATCH, d), jnp.float32)
          for dk, d in zip(data_keys, INPUT_DIMS)]
    eps = jax.random.normal(k_eps, (BATCH, LATENT_DIM), jnp.float32)

    in_slab = pack_inputs(xs, eps)                                   # (B, 128), once per batch

    out_slab = vae_forward_slab(in_slab, w_slab, b_slab)             # single Pallas call
    jax.block_until_ready(out_slab)

    x_hats, mus, logvars = unpack_outputs(out_slab)

    # shape sanity checks
    assert all(xh.shape == (BATCH, d) for xh, d in zip(x_hats, INPUT_DIMS))
    assert all(m.shape == (BATCH, LATENT_DIM) for m in mus)
    assert all(lv.shape == (BATCH, LATENT_DIM) for lv in logvars)

    # numerical check vs. an unpacked pure-JAX reference (packing is exact; tolerance covers
    # MXU f32-multipass vs XLA HIGHEST-precision matmul differences only — tight enough to
    # catch any lane-offset / packing bug, which would produce O(1) errors).
    ref_xh, ref_mu, ref_lv = reference_forward(xs, eps, enc_params, dec_params)
    for got, want in zip(x_hats + mus + logvars, ref_xh + ref_mu + ref_lv):
        assert jnp.allclose(got, want, atol=2e-3, rtol=2e-3), float(jnp.max(jnp.abs(got - want)))

    print("KERNEL_OK")
</pallas_src>

<mosaic_0001>
module attributes {stable_mosaic.version = 11 : i64} {
  func.func @vae_fused_kernel(%arg0: memref<8x128xf32, #tpu.memory_space<vmem>>, %arg1: memref<896x128xf32, #tpu.memory_space<vmem>>, %arg2: memref<8x128xf32, #tpu.memory_space<vmem>>, %arg3: memref<8x128xf32, #tpu.memory_space<vmem>>) attributes {dimension_semantics = [], scalar_prefetch = 0 : i64, scratch_operands = 0 : i64, tpu.core_type = #tpu.core_type<tc>} {
    %c0 = arith.constant 0 : index
    %c0_0 = arith.constant 0 : index
    %0 = vector.load %arg0[%c0, %c0_0] : memref<8x128xf32, #tpu.memory_space<vmem>>, vector<8x128xf32>
    %c0_1 = arith.constant 0 : index
    %c0_2 = arith.constant 0 : index
    %1 = vector.load %arg1[%c0_1, %c0_2] : memref<896x128xf32, #tpu.memory_space<vmem>>, vector<128x128xf32>
    %cst = arith.constant dense<0.000000e+00> : vector<8x128xf32>
    %2 = tpu.matmul %0, %1, %cst {dimension_numbers = #tpu.dot_dimension_numbers<[1], [0], [0], [1], [0, 0, 1, 1], [], []>} : vector<8x128xf32>, vector<128x128xf32>, vector<8x128xf32> -> vector<8x128xf32>
    %c0_3 = arith.constant 0 : index
    %c0_4 = arith.constant 0 : index
    %3 = vector.load %arg2[%c0_3, %c0_4] : memref<8x128xf32, #tpu.memory_space<vmem>>, vector<1x128xf32>
    %4 = vector.broadcast %3 : vector<1x128xf32> to vector<8x128xf32>
    %5 = arith.addf %2, %4 : vector<8x128xf32>
    %6 = math.tanh %5 : vector<8x128xf32>
    %c128 = arith.constant 128 : index
    %c0_5 = arith.constant 0 : index
    %7 = vector.load %arg1[%c128, %c0_5] : memref<896x128xf32, #tpu.memory_space<vmem>>, vector<128x128xf32>
    %cst_6 = arith.constant dense<0.000000e+00> : vector<8x128xf32>
    %8 = tpu.matmul %6, %7, %cst_6 {dimension_numbers = #tpu.dot_dimension_numbers<[1], [0], [0], [1], [0, 0, 1, 1], [], []>} : vector<8x128xf32>, vector<128x128xf32>, vector<8x128xf32> -> vector<8x128xf32>
    %c1 = arith.constant 1 : index
    %c0_7 = arith.constant 0 : index
    %9 = vector.load %arg2[%c1, %c0_7] : memref<8x128xf32, #tpu.memory_space<vmem>>, vector<1x128xf32>
    %10 = vector.broadcast %9 : vector<1x128xf32> to vector<8x128xf32>
    %11 = arith.addf %8, %10 : vector<8x128xf32>
    %12 = math.tanh %11 : vector<8x128xf32>
    %c256 = arith.constant 256 : index
    %c0_8 = arith.constant 0 : index
    %13 = vector.load %arg1[%c256, %c0_8] : memref<896x128xf32, #tpu.memory_space<vmem>>, vector<128x128xf32>
    %cst_9 = arith.constant dense<0.000000e+00> : vector<8x128xf32>
    %14 = tpu.matmul %12, %13, %cst_9 {dimension_numbers = #tpu.dot_dimension_numbers<[1], [0], [0], [1], [0, 0, 1, 1], [], []>} : vector<8x128xf32>, vector<128x128xf32>, vector<8x128xf32> -> vector<8x128xf32>
    %c2 = arith.constant 2 : index
    %c0_10 = arith.constant 0 : index
    %15 = vector.load %arg2[%c2, %c0_10] : memref<8x128xf32, #tpu.memory_space<vmem>>, vector<1x128xf32>
    %16 = vector.broadcast %15 : vector<1x128xf32> to vector<8x128xf32>
    %17 = arith.addf %14, %16 : vector<8x128xf32>
    %18 = math.tanh %17 : vector<8x128xf32>
    %c384 = arith.constant 384 : index
    %c0_11 = arith.constant 0 : index
    %19 = vector.load %arg1[%c384, %c0_11] : memref<896x128xf32, #tpu.memory_space<vmem>>, vector<128x128xf32>
    %cst_12 = arith.constant dense<0.000000e+00> : vector<8x128xf32>
    %20 = tpu.matmul %18, %19, %cst_12 {dimension_numbers = #tpu.dot_dimension_numbers<[1], [0], [0], [1], [0, 0, 1, 1], [], []>} : vector<8x128xf32>, vector<128x128xf32>, vector<8x128xf32> -> vector<8x128xf32>
    %c3 = arith.constant 3 : index
    %c0_13 = arith.constant 0 : index
    %21 = vector.load %arg2[%c3, %c0_13] : memref<8x128xf32, #tpu.memory_space<vmem>>, vector<1x128xf32>
    %22 = vector.broadcast %21 : vector<1x128xf32> to vector<8x128xf32>
    %23 = arith.addf %20, %22 : vector<8x128xf32>
    %24 = tpu.iota {dimensions = array<i32: 1>} : vector<1x128xi32>
    %c75_i32 = arith.constant 75 : i32
    %25 = vector.broadcast %c75_i32 : i32 to vector<1x128xi32>
    %26 = arith.cmpi sge, %24, %25 : vector<1x128xi32>
    %c90_i32 = arith.constant 90 : i32
    %27 = vector.broadcast %c90_i32 : i32 to vector<1x128xi32>
    %28 = arith.cmpi slt, %24, %27 : vector<1x128xi32>
    %29 = arith.andi %26, %28 : vector<1x128xi1>
    %cst_14 = arith.constant 5.000000e-01 : f32
    %30 = vector.broadcast %cst_14 : f32 to vector<8x128xf32>
    %31 = arith.mulf %30, %23 : vector<8x128xf32>
    %32 = math.exp %31 : vector<8x128xf32>
    %33 = arith.mulf %0, %32 : vector<8x128xf32>
    %34 = vector.shape_cast %29 : vector<1x128xi1> to vector<1x128xi1>
    %35 = vector.broadcast %34 : vector<1x128xi1> to vector<8x128xi1>
    %36 = arith.select %35, %33, %23 : vector<8x128xi1>, vector<8x128xf32>
    %c512 = arith.constant 512 : index
    %c0_15 = arith.constant 0 : index
    %37 = vector.load %arg1[%c512, %c0_15] : memref<896x128xf32, #tpu.memory_space<vmem>>, vector<128x128xf32>
    %cst_16 = arith.constant dense<0.000000e+00> : vector<8x128xf32>
    %38 = tpu.matmul %36, %37, %cst_16 {dimension_numbers = #tpu.dot_dimension_numbers<[1], [0], [0], [1], [0, 0, 1, 1], [], []>} : vector<8x128xf32>, vector<128x128xf32>, vector<8x128xf32> -> vector<8x128xf32>
    %c4 = arith.constant 4 : index
    %c0_17 = arith.constant 0 : index
    %39 = vector.load %arg2[%c4, %c0_17] : memref<8x128xf32, #tpu.memory_space<vmem>>, vector<1x128xf32>
    %40 = vector.broadcast %39 : vector<1x128xf32> to vector<8x128xf32>
    %41 = arith.addf %38, %40 : vector<8x128xf32>
    %42 = math.tanh %41 : vector<8x128xf32>
    %c640 = arith.constant 640 : index
    %c0_18 = arith.constant 0 : index
    %43 = vector.load %arg1[%c640, %c0_18] : memref<896x128xf32, #tpu.memory_space<vmem>>, vector<128x128xf32>
    %cst_19 = arith.constant dense<0.000000e+00> : vector<8x128xf32>
    %44 = tpu.matmul %42, %43, %cst_19 {dimension_numbers = #tpu.dot_dimension_numbers<[1], [0], [0], [1], [0, 0, 1, 1], [], []>} : vector<8x128xf32>, vector<128x128xf32>, vector<8x128xf32> -> vector<8x128xf32>
    %c5 = arith.constant 5 : index
    %c0_20 = arith.constant 0 : index
    %45 = vector.load %arg2[%c5, %c0_20] : memref<8x128xf32, #tpu.memory_space<vmem>>, vector<1x128xf32>
    %46 = vector.broadcast %45 : vector<1x128xf32> to vector<8x128xf32>
    %47 = arith.addf %44, %46 : vector<8x128xf32>
    %48 = math.tanh %47 : vector<8x128xf32>
    %c768 = arith.constant 768 : index
    %c0_21 = arith.constant 0 : index
    %49 = vector.load %arg1[%c768, %c0_21] : memref<896x128xf32, #tpu.memory_space<vmem>>, vector<128x128xf32>
    %cst_22 = arith.constant dense<0.000000e+00> : vector<8x128xf32>
    %50 = tpu.matmul %48, %49, %cst_22 {dimension_numbers = #tpu.dot_dimension_numbers<[1], [0], [0], [1], [0, 0, 1, 1], [], []>} : vector<8x128xf32>, vector<128x128xf32>, vector<8x128xf32> -> vector<8x128xf32>
    %c6 = arith.constant 6 : index
    %c0_23 = arith.constant 0 : index
    %51 = vector.load %arg2[%c6, %c0_23] : memref<8x128xf32, #tpu.memory_space<vmem>>, vector<1x128xf32>
    %52 = vector.broadcast %51 : vector<1x128xf32> to vector<8x128xf32>
    %53 = arith.addf %50, %52 : vector<8x128xf32>
    %54 = arith.addf %23, %53 : vector<8x128xf32>
    %c0_24 = arith.constant 0 : index
    %c0_25 = arith.constant 0 : index
    %55 = vector.load %arg3[%c0_24, %c0_25] : memref<8x128xf32, #tpu.memory_space<vmem>>, vector<8x128xf32>
    tpu.vector_store %arg3[%c0_24, %c0_25], %54 {strides = array<i32>} : memref<8x128xf32, #tpu.memory_space<vmem>>, vector<8x128xf32>,
    return
  }
}

</mosaic_0001>

<bundles_post_ra>
// kernel: vae_forward_slab.1
= control target key start
LH: loop header
LB: loop body
LE: loop exit
PB: predicated region body
PF: predicated region fallthrough
CT: control target
= control target key end

     0   :  { %8 = vsyncpa [#allocation3], 0  ;;  %s1535_s0 = inlined_call_operand.hbm [shape: f32[8,128], index: 0, kind: input, shape index: {}]   ;;  %s1536_s1 = inlined_call_operand.hbm [shape: f32[896,128], index: 1, kind: input, shape index: {}]   ;;  %s1537_s2 = inlined_call_operand.hbm [shape: f32[8,128], index: 2, kind: input, shape index: {}]   ;;  %s1538_s3 = inlined_call_operand.hbm [shape: f32[8,128], index: 3, kind: output, shape index: {}]  }
   0x1   :  { %9 = vsyncpa [#allocation6], 0 }
   0x2   :  { %10 = vsyncpa [#allocation4], 0  ;;  %s1379_s12 = smov [#allocation5]   ;;  %s1285_s16 = scalar_lea.hbm %s1536_s1, 14336 }
   0x3   :  { %s26_s13 = sshll.u32 %s1379_s12, 4  ;;  %p1286_p0 = scmp.ne.s32.totalorder %s1536_s1, %s1285_s16  ;;  %s27_s13 = int_to_ptr.vmem [resolvable:$true] %s26_s13 }
   0x4   :  { %p1289_p1 = scmp.lt.u32.totalorder %s1285_s16, %s1536_s1 }
   0x6   :  { %p1291_p2 = pnand %p1289_p1, %p1286_p0 }
   0x8   :  { %1294 = shalt.err (!%p1291_p2)
}
   0x9   :  { %s1295_s21 = scalar_lea.vmem %s27_s13, 14336  ;;  %p1300_p4 = scmp.lt.s32.totalorder %s27_s13, %s27_s13 }
   0xa   :  { %p1296_p3 = scmp.ne.s32.totalorder %s27_s13, %s1295_s21  ;;  %p1301_p5 = scmp.lt.s32.totalorder %s1295_s21, %s1295_s21 }
   0xc   :  { %p1302_p6 = por %p1301_p5, %p1300_p4 }
   0xe   :  { %p1303_p7 = pnand %p1302_p6, %p1296_p3 }
  0x10   :  { %1306 = shalt.err (!%p1303_p7)
}
  0x11   :  { %s1380_s22 = smov 128   ;;  %s1381_s23 = smov 8  }
  0x12   :  { %32 = dma.hbm_to_vmem [thread:$0]  %s1536_s1, 14336, %s27_s13, [#allocation6], %s1380_s22, %s1380_s22, %s1381_s23  }
  0x13   :  { %s1382_s26 = smov [#allocation2]   ;;  %s1383_s28 = smov [#allocation7]  }
  0x14   :  { %s17_s27 = sshll.u32 %s1382_s26, 4  ;;  %s39_s29 = sshll.u32 %s1383_s28, 4  ;;  %s18_s27 = int_to_ptr.vmem [resolvable:$true] %s17_s27  ;;  %s40_s29 = int_to_ptr.vmem [resolvable:$true] %s39_s29 }
  0x15   :  { %s1307_s5 = scalar_lea.hbm %s1535_s0, 128 }
  0x16   :  { %p1308_p8 = scmp.ne.s32.totalorder %s1535_s0, %s1307_s5  ;;  %p1311_p9 = scmp.lt.u32.totalorder %s1307_s5, %s1535_s0 }
  0x18   :  { %p1313_p10 = pnand %p1311_p9, %p1308_p8 }
  0x1a   :  { %1316 = shalt.err (!%p1313_p10)
}
  0x1b   :  { %s1317_s1 = scalar_lea.vmem %s18_s27, 128  ;;  %p1322_p12 = scmp.lt.s32.totalorder %s18_s27, %s18_s27 }
  0x1c   :  { %p1318_p11 = scmp.ne.s32.totalorder %s18_s27, %s1317_s1  ;;  %p1323_p13 = scmp.lt.s32.totalorder %s1317_s1, %s1317_s1 }
  0x1e   :  { %p1324_p0 = por %p1323_p13, %p1322_p12 }
  0x20   :  { %p1325_p1 = pnand %p1324_p0, %p1318_p11 }
  0x22   :  { %1328 = shalt.err (!%p1325_p1)
}
  0x23   :  { %20 = dma.hbm_to_vmem [thread:$0]  %s1535_s0, 128, %s18_s27, [#allocation3]  }
  0x24   :  { %s1329_s14 = scalar_lea.hbm %s1537_s2, 128 }
  0x25   :  { %p1330_p2 = scmp.ne.s32.totalorder %s1537_s2, %s1329_s14  ;;  %p1333_p3 = scmp.lt.u32.totalorder %s1329_s14, %s1537_s2 }
  0x27   :  { %p1335_p4 = pnand %p1333_p3, %p1330_p2 }
  0x29   :  { %1338 = shalt.err (!%p1335_p4)
}
  0x2a   :  { %s1339_s19 = scalar_lea.vmem %s40_s29, 128  ;;  %p1344_p6 = scmp.lt.s32.totalorder %s40_s29, %s40_s29 }
  0x2b   :  { %p1340_p5 = scmp.ne.s32.totalorder %s40_s29, %s1339_s19  ;;  %p1345_p7 = scmp.lt.s32.totalorder %s1339_s19, %s1339_s19 }
  0x2d   :  { %p1346_p8 = por %p1345_p7, %p1344_p6 }
  0x2f   :  { %p1347_p9 = pnand %p1346_p8, %p1340_p5 }
  0x31   :  { %1350 = shalt.err (!%p1347_p9)
}
  0x32   :  { %42 = dma.hbm_to_vmem [thread:$0]  %s1537_s2, 128, %s40_s29, [#allocation6]  }
  0x33   :  { %1373 = dma.done.wait [#allocation3], 128  }
  0x34   :  { %1374 = vsyncadd [#allocation3], 4294967168 }
  0x35   :  { %1375 = dma.done.wait [#allocation6], 14464  }
  0x36   :  { %1376 = vsyncadd [#allocation6], 4294952832  ;;  %v1384_v0 = vmov 0.0|0.0   ;;  %vm1385_vm0 = vmmov 0   ;;  %v1386_v1 = vmov 0.0   ;;  %v53_v2 = vld [vmem:[#allocation5] sm:$0xff] }
  0x37   :  { %1096 = vmatprep.subr.bf16.mxu0 %v1384_v0  ;;  %883 = vmatprep.mubr.msk.f32.mxu0 %vm1385_vm0, %v1386_v1  ;;  %v54_v3 = vld [vmem:[#allocation5 + $0x8] sm:$0xff]  ;;  %v55_v4 = vld [vmem:[#allocation5 + $0x10] sm:$0xff]  ;;  %v56_v6 = vld [vmem:[#allocation5 + $0x18] sm:$0xff]  ;;  %s1387_s2 = smov [#allocation8]  }
  0x38   :  { %1120 = vmatprep.subr.bf16.mxu1 %v1384_v0  ;;  %918 = vmatprep.mubr.msk.f32.mxu1 %vm1385_vm0, %v1386_v1  ;;  %v1097_v5 = vpack.c.bf16 %v54_v3, %v53_v2  ;;  %v1100_v7 = vpack.c.bf16 %v56_v6, %v55_v4  ;;  %v57_v8 = vld [vmem:[#allocation5 + $0x20] sm:$0xff]  ;;  %v58_v9 = vld [vmem:[#allocation5 + $0x28] sm:$0xff]  ;;  %v147_v12 = vld [vmem:[#allocation5 + $0x90] sm:$0xff]  ;;  %s715_s21 = sshll.u32 %s1387_s2, 4  ;;  %s716_s21 = int_to_ptr.vmem [resolvable:$true] %s715_s21 }
  0x39   :  { %v145_v10 = vld [vmem:[#allocation5 + $0x80] sm:$0xff]  ;;  %v146_v11 = vld [vmem:[#allocation5 + $0x88] sm:$0xff]  ;;  %v148_v13 = vld [vmem:[#allocation5 + $0x98] sm:$0xff]  ;;  %v1103_v14 = vpack.c.bf16 %v58_v9, %v57_v8  ;;  %s1351_s22 = scalar_lea.vmem %s716_s21, 128  ;;  %p1356_p11 = scmp.lt.s32.totalorder %s716_s21, %s716_s21 }
  0x3a   :  { %1098 = vmatpush3.bf16.msra.mxu0 %v1097_v5  ;;  %v1121_v15 = vpack.c.bf16 %v146_v11, %v145_v10  ;;  %v59_v16 = vld [vmem:[#allocation5 + $0x30] sm:$0xff]  ;;  %v60_v17 = vld [vmem:[#allocation5 + $0x38] sm:$0xff]  ;;  %v1124_v18 = vpack.c.bf16 %v148_v13, %v147_v12  ;;  %v149_v19 = vld [vmem:[#allocation5 + $0xa0] sm:$0xff]  ;;  %p1352_p10 = scmp.ne.s32.totalorder %s716_s21, %s1351_s22  ;;  %p1357_p12 = scmp.lt.s32.totalorder %s1351_s22, %s1351_s22 }
  0x3b   :  { %1099 = vmatprep.subr.bf16.mxu0 %v1384_v0  ;;  %v150_v20 = vld [vmem:[#allocation5 + $0xa8] sm:$0xff]  ;;  %v1106_v21 = vpack.c.bf16 %v60_v17, %v59_v16  ;;  %v61_v22 = vld [vmem:[#allocation5 + $0x40] sm:$0xff]  ;;  %v151_v25 = vld [vmem:[#allocation5 + $0xb0] sm:$0xff] }
  0x3c   :  { %1122 = vmatpush3.bf16.msra.mxu1 %v1121_v15  ;;  %v62_v23 = vld [vmem:[#allocation5 + $0x48] sm:$0xff]  ;;  %v1127_v24 = vpack.c.bf16 %v150_v20, %v149_v19  ;;  %v152_v26 = vld [vmem:[#allocation5 + $0xb8] sm:$0xff]  ;;  %v63_v28 = vld [vmem:[#allocation5 + $0x50] sm:$0xff]  ;;  %p1358_p13 = por %p1357_p12, %p1356_p11 }
  0x3d   :  { %1123 = vmatprep.subr.bf16.mxu1 %v1384_v0  ;;  %v1109_v27 = vpack.c.bf16 %v62_v23, %v61_v22  ;;  %v64_v29 = vld [vmem:[#allocation5 + $0x58] sm:$0xff]  ;;  %v1130_v30 = vpack.c.bf16 %v152_v26, %v151_v25  ;;  %v153_v31 = vld [vmem:[#allocation5 + $0xc0] sm:$0xff]  ;;  %v154_v32 = vld [vmem:[#allocation5 + $0xc8] sm:$0xff] }
  0x3e   :  { %1101 = vmatpush3.bf16.msra.mxu0 %v1100_v7  ;;  %v1112_v33 = vpack.c.bf16 %v64_v29, %v63_v28  ;;  %v65_v34 = vld [vmem:[#allocation5 + $0x60] sm:$0xff]  ;;  %v66_v35 = vld [vmem:[#allocation5 + $0x68] sm:$0xff]  ;;  %v1133_v36 = vpack.c.bf16 %v154_v32, %v153_v31  ;;  %v67_v38 = vld [vmem:[#allocation5 + $0x70] sm:$0xff]  ;;  %p1359_p0 = pnand %p1358_p13, %p1352_p10 }
  0x3f   :  { %1102 = vmatprep.subr.bf16.mxu0 %v1384_v0  ;;  %v1115_v37 = vpack.c.bf16 %v66_v35, %v65_v34  ;;  %v68_v39 = vld [vmem:[#allocation5 + $0x78] sm:$0xff]  ;;  %v155_v42 = vld [vmem:[#allocation5 + $0xd0] sm:$0xff]  ;;  %v157_v45 = vld [vmem:[#allocation5 + $0xe0] sm:$0xff] }
  0x40   :  { %1125 = vmatpush3.bf16.msra.mxu1 %v1124_v18  ;;  %v1118_v40 = vpack.c.bf16 %v68_v39, %v67_v38  ;;  %v1462_v41 = vld [vmem:[#allocation2] sm:$0xff]  ;;  %v158_v46 = vld [vmem:[#allocation5 + $0xe8] sm:$0xff]  ;;  %v159_v48 = vld [vmem:[#allocation5 + $0xf0] sm:$0xff] }
  0x41   :  { %1126 = vmatprep.subr.bf16.mxu1 %v1384_v0  ;;  %v156_v43 = vld [vmem:[#allocation5 + $0xd8] sm:$0xff]  ;;  %v1139_v47 = vpack.c.bf16 %v158_v46, %v157_v45  ;;  %v237_v51 = vld [vmem:[#allocation5 + $0x100] sm:$0xff]  ;;  %v238_v52 = vld [vmem:[#allocation5 + $0x108] sm:$0xff] }
  0x42   :  { %1104 = vmatpush3.bf16.msra.mxu0 %v1103_v14  ;;  %v1136_v44 = vpack.c.bf16 %v156_v43, %v155_v42  ;;  %v160_v49 = vld [vmem:[#allocation5 + $0xf8] sm:$0xff]  ;;  %v239_v53 = vld [vmem:[#allocation5 + $0x110] sm:$0xff]  ;;  %v1145_v54 = vpack.c.bf16 %v238_v52, %v237_v51  ;;  %v241_v57 = vld [vmem:[#allocation5 + $0x120] sm:$0xff] }
  0x43   :  { %1105 = vmatprep.subr.bf16.mxu0 %v1384_v0  ;;  %v1142_v50 = vpack.c.bf16 %v160_v49, %v159_v48  ;;  %v240_v55 = vld [vmem:[#allocation5 + $0x118] sm:$0xff]  ;;  %v242_v58 = vld [vmem:[#allocation5 + $0x128] sm:$0xff]  ;;  %v243_v60 = vld [vmem:[#allocation5 + $0x130] sm:$0xff] }
  0x44   :  { %1128 = vmatpush3.bf16.msra.mxu1 %v1127_v24  ;;  %v1148_v56 = vpack.c.bf16 %v240_v55, %v239_v53  ;;  %v1151_v59 = vpack.c.bf16 %v242_v58, %v241_v57  ;;  %v244_v61 = vld [vmem:[#allocation5 + $0x138] sm:$0xff]  ;;  %v245_v63 = vld [vmem:[#allocation5 + $0x140] sm:$0xff]  ;;  %v246_v2 = vld [vmem:[#allocation5 + $0x148] sm:$0xff] }
  0x45   :  { %1129 = vmatprep.subr.bf16.mxu1 %v1384_v0  ;;  %v1154_v62 = vpack.c.bf16 %v244_v61, %v243_v60  ;;  %v1157_v3 = vpack.c.bf16 %v246_v2, %v245_v63  ;;  %v725_v4 = vld [vmem:[#allocation7] ss:$0 sm:$0xff]  ;;  %v247_v9 = vld [vmem:[#allocation5 + $0x150] sm:$0xff]  ;;  %v248_v10 = vld [vmem:[#allocation5 + $0x158] sm:$0xff] }
  0x46   :  { %1107 = vmatpush3.bf16.msra.mxu0 %v1106_v21  ;;  %v1160_v11 = vpack.c.bf16 %v248_v10, %v247_v9  ;;  %v249_v12 = vld [vmem:[#allocation5 + $0x160] sm:$0xff]  ;;  %v250_v13 = vld [vmem:[#allocation5 + $0x168] sm:$0xff]  ;;  %v251_v15 = vld [vmem:[#allocation5 + $0x170] sm:$0xff] }
  0x47   :  { %1108 = vmatprep.subr.bf16.mxu0 %v1384_v0  ;;  %v1163_v14 = vpack.c.bf16 %v250_v13, %v249_v12  ;;  %v252_v16 = vld [vmem:[#allocation5 + $0x178] sm:$0xff]  ;;  %v329_v18 = vld [vmem:[#allocation5 + $0x180] sm:$0xff]  ;;  %v330_v19 = vld [vmem:[#allocation5 + $0x188] sm:$0xff] }
  0x48   :  { %1131 = vmatpush3.bf16.msra.mxu1 %v1130_v30  ;;  %v1166_v17 = vpack.c.bf16 %v252_v16, %v251_v15  ;;  %v331_v20 = vld [vmem:[#allocation5 + $0x190] sm:$0xff]  ;;  %v1169_v21 = vpack.c.bf16 %v330_v19, %v329_v18  ;;  %v332_v22 = vld [vmem:[#allocation5 + $0x198] sm:$0xff]  ;;  %v333_v24 = vld [vmem:[#allocation5 + $0x1a0] sm:$0xff] }
  0x49   :  { %1132 = vmatprep.subr.bf16.mxu1 %v1384_v0  ;;  %v1172_v23 = vpack.c.bf16 %v332_v22, %v331_v20  ;;  %v334_v25 = vld [vmem:[#allocation5 + $0x1a8] sm:$0xff]  ;;  %v336_v28 = vld [vmem:[#allocation5 + $0x1b8] sm:$0xff]  ;;  %v337_v30 = vld [vmem:[#allocation5 + $0x1c0] sm:$0xff] }
  0x4a   :  { %1110 = vmatpush3.bf16.msra.mxu0 %v1109_v27  ;;  %v1175_v26 = vpack.c.bf16 %v334_v25, %v333_v24  ;;  %v335_v27 = vld [vmem:[#allocation5 + $0x1b0] sm:$0xff]  ;;  %v338_v31 = vld [vmem:[#allocation5 + $0x1c8] sm:$0xff]  ;;  %v340_v39 = vld [vmem:[#allocation5 + $0x1d8] sm:$0xff] }
  0x4b   :  { %1111 = vmatprep.subr.bf16.mxu0 %v1384_v0  ;;  %v1178_v29 = vpack.c.bf16 %v336_v28, %v335_v27  ;;  %v1181_v32 = vpack.c.bf16 %v338_v31, %v337_v30  ;;  %v339_v38 = vld [vmem:[#allocation5 + $0x1d0] sm:$0xff]  ;;  %v341_v42 = vld [vmem:[#allocation5 + $0x1e0] sm:$0xff]  ;;  %v342_v43 = vld [vmem:[#allocation5 + $0x1e8] sm:$0xff] }
  0x4c   :  { %1134 = vmatpush3.bf16.msra.mxu1 %v1133_v36  ;;  %v343_v45 = vld [vmem:[#allocation5 + $0x1f0] sm:$0xff]  ;;  %v344_v46 = vld [vmem:[#allocation5 + $0x1f8] sm:$0xff]  ;;  %v432_v48 = vld [vmem:[#allocation5 + $0x200] sm:$0xff] }
  0x4d   :  { %1135 = vmatprep.subr.bf16.mxu1 %v1384_v0  ;;  %v433_v49 = vld [vmem:[#allocation5 + $0x208] sm:$0xff]  ;;  %v435_v52 = vld [vmem:[#allocation5 + $0x218] sm:$0xff]  ;;  %v727_v57 = vld [vmem:[#allocation7 + $0x2] ss:$0 sm:$0xff] }
  0x4e   :  { %1113 = vmatpush3.bf16.msra.mxu0 %v1112_v33  ;;  %v726_v33 = vld [vmem:[#allocation7 + $0x1] ss:$0 sm:$0xff]  ;;  %v1193_v51 = vpack.c.bf16 %v433_v49, %v432_v48  ;;  %v437_v55 = vld [vmem:[#allocation5 + $0x228] sm:$0xff]  ;;  %v439_v63 = vld [vmem:[#allocation5 + $0x238] sm:$0xff] }
  0x4f   :  { %1114 = vmatprep.subr.bf16.mxu0 %v1384_v0  ;;  %v445_v10 = vld [vmem:[#allocation5 + $0x268] sm:$0xff]  ;;  %v446_v12 = vld [vmem:[#allocation5 + $0x270] sm:$0xff]  ;;  %v447_v13 = vld [vmem:[#allocation5 + $0x278] sm:$0xff] }
  0x50   :  { %1137 = vmatpush3.bf16.msra.mxu1 %v1136_v44  ;;  %v1187_v44 = vpack.c.bf16 %v342_v43, %v341_v42  ;;  %v524_v15 = vld [vmem:[#allocation5 + $0x280] sm:$0xff]  ;;  %v525_v16 = vld [vmem:[#allocation5 + $0x288] sm:$0xff]  ;;  %v527_v19 = vld [vmem:[#allocation5 + $0x298] sm:$0xff] }
  0x51   :  { %1138 = vmatprep.subr.bf16.mxu1 %v1384_v0  ;;  %v1217_v18 = vpack.c.bf16 %v525_v16, %v524_v15  ;;  %v529_v22 = vld [vmem:[#allocation5 + $0x2a8] sm:$0xff]  ;;  %v530_v24 = vld [vmem:[#allocation5 + $0x2b0] sm:$0xff]  ;;  %v531_v25 = vld [vmem:[#allocation5 + $0x2b8] sm:$0xff] }
  0x52   :  { %1116 = vmatpush3.bf16.msra.mxu0 %v1115_v37  ;;  %v532_v27 = vld [vmem:[#allocation5 + $0x2c0] sm:$0xff]  ;;  %v533_v28 = vld [vmem:[#allocation5 + $0x2c8] sm:$0xff]  ;;  %v534_v42 = vld [vmem:[#allocation5 + $0x2d0] sm:$0xff] }
  0x53   :  { %1117 = vmatprep.subr.bf16.mxu0 %v1384_v0  ;;  %v728_v30 = vld [vmem:[#allocation7 + $0x3] ss:$0 sm:$0xff]  ;;  %v535_v43 = vld [vmem:[#allocation5 + $0x2d8] sm:$0xff]  ;;  %v538_v48 = vld [vmem:[#allocation5 + $0x2f0] sm:$0xff] }
  0x54   :  { %1140 = vmatpush3.bf16.msra.mxu1 %v1139_v47  ;;  %v1190_v47 = vpack.c.bf16 %v344_v46, %v343_v45  ;;  %v536_v45 = vld [vmem:[#allocation5 + $0x2e0] sm:$0xff]  ;;  %v537_v46 = vld [vmem:[#allocation5 + $0x2e8] sm:$0xff]  ;;  %v539_v49 = vld [vmem:[#allocation5 + $0x2f8] sm:$0xff] }
  0x55   :  { %1141 = vmatprep.subr.bf16.mxu1 %v1384_v0  ;;  %v730_v16 = vld [vmem:[#allocation7 + $0x5] ss:$0 sm:$0xff] }
  0x56   :  { %1119 = vmatpush3.bf16.msra.mxu0 %v1118_v40  ;;  %v1184_v40 = vpack.c.bf16 %v340_v39, %v339_v38 }
  0x57   :  { %1144 = vmatprep.subr.bf16.mxu0 %v1384_v0 }
  0x58   :  { %1143 = vmatpush3.bf16.msra.mxu1 %v1142_v50  ;;  %v434_v50 = vld [vmem:[#allocation5 + $0x210] sm:$0xff] }
  0x59   :  { %884 = vmatmul.mubr.f32.vlgmr.msra.gmra.mrb[0].mxu0 %v1462_v41  ;;  %1168 = vmatprep.subr.bf16.mxu1 %v1384_v0  ;;  %v1196_v53 = vpack.c.bf16 %v435_v52, %v434_v50  ;;  %v1238_v50 = vpack.c.bf16 %v539_v49, %v538_v48  ;;  %v618_v52 = vld [vmem:[#allocation5 + $0x310] sm:$0xff] }
  0x5a   :  { %953 = vmatprep.mubr.msk.f32.mxu0 %vm1385_vm0, %v1386_v1  ;;  %1146 = vmatpush3.bf16.msra.mxu0 %v1145_v54  ;;  %v436_v54 = vld [vmem:[#allocation5 + $0x220] sm:$0xff] }
  0x5b   :  { %1147 = vmatprep.subr.bf16.mxu0 %v1384_v0 }
  0x5e   :  { %1149 = vmatpush3.bf16.msra.mxu0 %v1148_v56  ;;  %v1199_v56 = vpack.c.bf16 %v437_v55, %v436_v54  ;;  %v620_v55 = vld [vmem:[#allocation5 + $0x320] sm:$0xff] }
  0x5f   :  { %1150 = vmatprep.subr.bf16.mxu0 %v1384_v0 }
  0x62   :  { %1152 = vmatpush3.bf16.msra.mxu0 %v1151_v59 }
  0x63   :  { %1153 = vmatprep.subr.bf16.mxu0 %v1384_v0 }
  0x66   :  { %1155 = vmatpush3.bf16.msra.mxu0 %v1154_v62  ;;  %v438_v62 = vld [vmem:[#allocation5 + $0x230] sm:$0xff] }
  0x67   :  { %1156 = vmatprep.subr.bf16.mxu0 %v1384_v0  ;;  %v1202_v2 = vpack.c.bf16 %v439_v63, %v438_v62  ;;  %v625_v62 = vld [vmem:[#allocation5 + $0x348] sm:$0xff] }
  0x6a   :  { %1158 = vmatpush3.bf16.msra.mxu0 %v1157_v3  ;;  %v440_v3 = vld [vmem:[#allocation5 + $0x240] sm:$0xff] }
  0x6b   :  { %1159 = vmatprep.subr.bf16.mxu0 %v1384_v0 }
  0x6e   :  { %1161 = vmatpush3.bf16.msra.mxu0 %v1160_v11 }
  0x6f   :  { %1162 = vmatprep.subr.bf16.mxu0 %v1384_v0 }
  0x72   :  { %1164 = vmatpush3.bf16.msra.mxu0 %v1163_v14  ;;  %v1214_v14 = vpack.c.bf16 %v447_v13, %v446_v12  ;;  %v630_v13 = vld [vmem:[#allocation5 + $0x370] sm:$0xff] }
  0x73   :  { %1165 = vmatprep.subr.bf16.mxu0 %v1384_v0 }
  0x76   :  { %1167 = vmatpush3.bf16.msra.mxu0 %v1166_v17  ;;  %v526_v17 = vld [vmem:[#allocation5 + $0x290] sm:$0xff] }
  0x77   :  { %1192 = vmatprep.subr.bf16.mxu0 %v1384_v0  ;;  %v1220_v20 = vpack.c.bf16 %v527_v19, %v526_v17 }
 0x12c   :  { %v140_v5 = vpop.f32.mrb[0].mxu0 }
 0x12d   :  { %v141_v6 = vadd.f32 %v725_v4, %v140_v5  ;;  %v885_v7 = vpop.f32.mrb[1].mxu0  ;;  %v441_v4 = vld [vmem:[#allocation5 + $0x248] sm:$0xff] }
 0x12e   :  { %v1205_v5 = vpack.c.bf16 %v441_v4, %v440_v3  ;;  %v443_v7 = vld [vmem:[#allocation5 + $0x258] sm:$0xff] }
 0x12f   :  { %1273 = vtanh.f32 %v141_v6  ;;  %v442_v6 = vld [vmem:[#allocation5 + $0x250] sm:$0xff] }
 0x130   :  { %v1208_v9 = vpack.c.bf16 %v443_v7, %v442_v6  ;;  %v626_v7 = vld [vmem:[#allocation5 + $0x350] sm:$0xff] }
 0x139   :  { %v1274_v8 = vpop.eup %1273 }
 0x13a   :  { %919 = vmatmul.mubr.f32.vlgmr.msra.gmra.mrb[0].mxu1 %v1274_v8  ;;  %v444_v8 = vld [vmem:[#allocation5 + $0x260] sm:$0xff] }
 0x13b   :  { %988 = vmatprep.mubr.msk.f32.mxu1 %vm1385_vm0, %v1386_v1  ;;  %1170 = vmatpush3.bf16.msra.mxu1 %v1169_v21  ;;  %v1211_v11 = vpack.c.bf16 %v445_v10, %v444_v8  ;;  %v528_v21 = vld [vmem:[#allocation5 + $0x2a0] sm:$0xff]  ;;  %v627_v8 = vld [vmem:[#allocation5 + $0x358] sm:$0xff] }
 0x13c   :  { %1171 = vmatprep.subr.bf16.mxu1 %v1384_v0  ;;  %v628_v10 = vld [vmem:[#allocation5 + $0x360] sm:$0xff] }
 0x13f   :  { %1173 = vmatpush3.bf16.msra.mxu1 %v1172_v23  ;;  %v1223_v23 = vpack.c.bf16 %v529_v22, %v528_v21  ;;  %v731_v21 = vld [vmem:[#allocation7 + $0x6] ss:$0 sm:$0xff] }
 0x140   :  { %1174 = vmatprep.subr.bf16.mxu1 %v1384_v0 }
 0x143   :  { %1176 = vmatpush3.bf16.msra.mxu1 %v1175_v26  ;;  %v1226_v26 = vpack.c.bf16 %v531_v25, %v530_v24 }
 0x144   :  { %1177 = vmatprep.subr.bf16.mxu1 %v1384_v0 }
 0x147   :  { %1179 = vmatpush3.bf16.msra.mxu1 %v1178_v29  ;;  %v1229_v29 = vpack.c.bf16 %v533_v28, %v532_v27 }
 0x148   :  { %1180 = vmatprep.subr.bf16.mxu1 %v1384_v0 }
 0x14b   :  { %1182 = vmatpush3.bf16.msra.mxu1 %v1181_v32 }
 0x14c   :  { %1183 = vmatprep.subr.bf16.mxu1 %v1384_v0 }
 0x14f   :  { %1185 = vmatpush3.bf16.msra.mxu1 %v1184_v40 }
 0x150   :  { %1186 = vmatprep.subr.bf16.mxu1 %v1384_v0 }
 0x153   :  { %1188 = vmatpush3.bf16.msra.mxu1 %v1187_v44  ;;  %v1232_v44 = vpack.c.bf16 %v535_v43, %v534_v42 }
 0x154   :  { %1189 = vmatprep.subr.bf16.mxu1 %v1384_v0 }
 0x157   :  { %1191 = vmatpush3.bf16.msra.mxu1 %v1190_v47  ;;  %v1235_v47 = vpack.c.bf16 %v537_v46, %v536_v45 }
 0x158   :  { %1216 = vmatprep.subr.bf16.mxu1 %v1384_v0 }
 0x20d   :  { %v232_v34 = vpop.f32.mrb[0].mxu1 }
 0x20e   :  { %v233_v35 = vadd.f32 %v726_v33, %v232_v34  ;;  %v920_v36 = vpop.f32.mrb[1].mxu1 }
 0x20f   :  { %v420_v36 = vlaneseq }
 0x210   :  { %1275 = vtanh.f32 %v233_v35 }
 0x21a   :  { %v1276_v37 = vpop.eup %1275 }
 0x21b   :  { %954 = vmatmul.mubr.f32.vlgmr.msra.gmra.mrb[2].mxu0 %v1276_v37  ;;  %v421_v37 = vand.u32 127, %v420_v36 }
 0x21c   :  { %1023 = vmatprep.mubr.msk.f32.mxu0 %vm1385_vm0, %v1386_v1  ;;  %1194 = vmatpush3.bf16.msra.mxu0 %v1193_v51  ;;  %v617_v51 = vld [vmem:[#allocation5 + $0x308] sm:$0xff] }
 0x21d   :  { %1195 = vmatprep.subr.bf16.mxu0 %v1384_v0  ;;  %vm422_vm1 = vcmp.ge.s32.totalorder %v421_v37, 75  ;;  %vm423_vm2 = vcmp.lt.s32.totalorder %v421_v37, 90 }
 0x21e   :  { %vm424_vm3 = vmand %vm422_vm1, %vm423_vm2 }
 0x220   :  { %1197 = vmatpush3.bf16.msra.mxu0 %v1196_v53  ;;  %v619_v53 = vld [vmem:[#allocation5 + $0x318] sm:$0xff] }
 0x221   :  { %1198 = vmatprep.subr.bf16.mxu0 %v1384_v0  ;;  %v1244_v54 = vpack.c.bf16 %v619_v53, %v618_v52 }
 0x224   :  { %1200 = vmatpush3.bf16.msra.mxu0 %v1199_v56  ;;  %v621_v56 = vld [vmem:[#allocation5 + $0x328] sm:$0xff] }
 0x225   :  { %1201 = vmatprep.subr.bf16.mxu0 %v1384_v0 }
 0x228   :  { %1203 = vmatpush3.bf16.msra.mxu0 %v1202_v2  ;;  %v729_v2 = vld [vmem:[#allocation7 + $0x4] ss:$0 sm:$0xff] }
 0x229   :  { %1204 = vmatprep.subr.bf16.mxu0 %v1384_v0 }
 0x22c   :  { %1206 = vmatpush3.bf16.msra.mxu0 %v1205_v5 }
 0x22d   :  { %1207 = vmatprep.subr.bf16.mxu0 %v1384_v0 }
 0x230   :  { %1209 = vmatpush3.bf16.msra.mxu0 %v1208_v9  ;;  %v1256_v9 = vpack.c.bf16 %v627_v8, %v626_v7 }
 0x231   :  { %1210 = vmatprep.subr.bf16.mxu0 %v1384_v0 }
 0x234   :  { %1212 = vmatpush3.bf16.msra.mxu0 %v1211_v11  ;;  %v629_v11 = vld [vmem:[#allocation5 + $0x368] sm:$0xff] }
 0x235   :  { %1213 = vmatprep.subr.bf16.mxu0 %v1384_v0  ;;  %v1259_v12 = vpack.c.bf16 %v629_v11, %v628_v10 }
 0x238   :  { %1215 = vmatpush3.bf16.msra.mxu0 %v1214_v14  ;;  %v631_v14 = vld [vmem:[#allocation5 + $0x378] sm:$0xff] }
 0x239   :  { %1240 = vmatprep.subr.bf16.mxu0 %v1384_v0  ;;  %v1262_v15 = vpack.c.bf16 %v631_v14, %v630_v13 }
 0x2ee   :  { %v324_v58 = vpop.f32.mrb[2].mxu0 }
 0x2ef   :  { %v325_v59 = vadd.f32 %v727_v57, %v324_v58  ;;  %v955_v60 = vpop.f32.mrb[3].mxu0  ;;  %v1247_v57 = vpack.c.bf16 %v621_v56, %v620_v55  ;;  %v622_v58 = vld [vmem:[#allocation5 + $0x330] sm:$0xff] }
 0x2f1   :  { %1277 = vtanh.f32 %v325_v59  ;;  %v623_v59 = vld [vmem:[#allocation5 + $0x338] sm:$0xff] }
 0x2f2   :  { %v1250_v60 = vpack.c.bf16 %v623_v59, %v622_v58 }
 0x2fb   :  { %v1278_v61 = vpop.eup %1277 }
 0x2fc   :  { %989 = vmatmul.mubr.f32.vlgmr.msra.gmra.mrb[2].mxu1 %v1278_v61  ;;  %v624_v61 = vld [vmem:[#allocation5 + $0x340] sm:$0xff] }
 0x2fd   :  { %1058 = vmatprep.mubr.msk.f32.mxu1 %vm1385_vm0, %v1386_v1  ;;  %1218 = vmatpush3.bf16.msra.mxu1 %v1217_v18  ;;  %v1253_v63 = vpack.c.bf16 %v625_v62, %v624_v61 }
 0x2fe   :  { %1219 = vmatprep.subr.bf16.mxu1 %v1384_v0 }
 0x301   :  { %1221 = vmatpush3.bf16.msra.mxu1 %v1220_v20 }
 0x302   :  { %1222 = vmatprep.subr.bf16.mxu1 %v1384_v0 }
 0x305   :  { %1224 = vmatpush3.bf16.msra.mxu1 %v1223_v23 }
 0x306   :  { %1225 = vmatprep.subr.bf16.mxu1 %v1384_v0 }
 0x309   :  { %1227 = vmatpush3.bf16.msra.mxu1 %v1226_v26 }
 0x30a   :  { %1228 = vmatprep.subr.bf16.mxu1 %v1384_v0 }
 0x30d   :  { %1230 = vmatpush3.bf16.msra.mxu1 %v1229_v29 }
 0x30e   :  { %1231 = vmatprep.subr.bf16.mxu1 %v1384_v0 }
 0x311   :  { %1233 = vmatpush3.bf16.msra.mxu1 %v1232_v44 }
 0x312   :  { %1234 = vmatprep.subr.bf16.mxu1 %v1384_v0 }
 0x315   :  { %1236 = vmatpush3.bf16.msra.mxu1 %v1235_v47 }
 0x316   :  { %1237 = vmatprep.subr.bf16.mxu1 %v1384_v0 }
 0x319   :  { %1239 = vmatpush3.bf16.msra.mxu1 %v1238_v50 }
 0x3cf   :  { %v416_v31 = vpop.f32.mrb[2].mxu1 }
 0x3d0   :  { %v1506_v32 = vadd.f32 %v728_v30, %v416_v31  ;;  %v990_v33 = vpop.f32.mrb[3].mxu1 }
 0x3d2   :  { %v425_v34 = vmul.f32 0.5, %v1506_v32 }
 0x3d4   :  { %v426_v35 = vmul.f32 1.442695, %v425_v34 }
 0x3d6   :  { %1279 = vpow2.f32 %v426_v35 }
 0x3e0   :  { %v1280_v38 = vpop.eup %1279 }
 0x3e1   :  { %v428_v39 = vmul.f32 %v1280_v38, %v1462_v41  ;;  %v616_v41 = vld [vmem:[#allocation5 + $0x300] sm:$0xff] }
 0x3e3   :  { %v431_v40 = vsel %vm424_vm3, %v428_v39, %v1506_v32 }
 0x3e4   :  { %1024 = vmatmul.mubr.f32.vlgmr.msra.gmra.mrb[4].mxu0 %v431_v40 }
 0x3e5   :  { %1093 = vmatprep.mubr.msk.f32.mxu0 %vm1385_vm0, %v1386_v1  ;;  %v1241_v1 = vpack.c.bf16 %v617_v51, %v616_v41 }
 0x3e7   :  { %1242 = vmatpush3.bf16.msra.mxu0 %v1241_v1 }
 0x3e8   :  { %1243 = vmatprep.subr.bf16.mxu0 %v1384_v0 }
 0x3eb   :  { %1245 = vmatpush3.bf16.msra.mxu0 %v1244_v54 }
 0x3ec   :  { %1246 = vmatprep.subr.bf16.mxu0 %v1384_v0 }
 0x3ef   :  { %1248 = vmatpush3.bf16.msra.mxu0 %v1247_v57 }
 0x3f0   :  { %1249 = vmatprep.subr.bf16.mxu0 %v1384_v0 }
 0x3f3   :  { %1251 = vmatpush3.bf16.msra.mxu0 %v1250_v60 }
 0x3f4   :  { %1252 = vmatprep.subr.bf16.mxu0 %v1384_v0 }
 0x3f7   :  { %1254 = vmatpush3.bf16.msra.mxu0 %v1253_v63 }
 0x3f8   :  { %1255 = vmatprep.subr.bf16.mxu0 %v1384_v0 }
 0x3fb   :  { %1257 = vmatpush3.bf16.msra.mxu0 %v1256_v9 }
 0x3fc   :  { %1258 = vmatprep.subr.bf16.mxu0 %v1384_v0 }
 0x3ff   :  { %1260 = vmatpush3.bf16.msra.mxu0 %v1259_v12 }
 0x400   :  { %1261 = vmatprep.subr.bf16.mxu0 %v1384_v0 }
 0x403   :  { %1263 = vmatpush3.bf16.msra.mxu0 %v1262_v15 }
 0x4b7   :  { %v519_v3 = vpop.f32.mrb[4].mxu0 }
 0x4b8   :  { %v520_v4 = vadd.f32 %v729_v2, %v519_v3  ;;  %v1025_v5 = vpop.f32.mrb[5].mxu0 }
 0x4ba   :  { %1281 = vtanh.f32 %v520_v4 }
 0x4c4   :  { %v1282_v6 = vpop.eup %1281 }
 0x4c5   :  { %1059 = vmatmul.mubr.f32.vlgmr.msra.gmra.mrb[4].mxu1 %v1282_v6 }
 0x598   :  { %v611_v17 = vpop.f32.mrb[4].mxu1 }
 0x599   :  { %v612_v18 = vadd.f32 %v730_v16, %v611_v17  ;;  %v1060_v19 = vpop.f32.mrb[5].mxu1 }
 0x59b   :  { %1283 = vtanh.f32 %v612_v18 }
 0x5a5   :  { %v1284_v20 = vpop.eup %1283 }
 0x5a6   :  { %1094 = vmatmul.mubr.f32.vlgmr.msra.gmra.mrb[6].mxu0 %v1284_v20 }
 0x679   :  { %v703_v22 = vpop.f32.mrb[6].mxu0 }
 0x67a   :  { %v704_v23 = vadd.f32 %v731_v21, %v703_v22  ;;  %v1095_v24 = vpop.f32.mrb[7].mxu0 }
 0x67c   :  { %v707_v25 = vadd.f32 %v704_v23, %v1506_v32 }
 0x67e   :  { %708 = vst [vmem:[#allocation8] sm:$0xff] %v707_v25 }
 0x67f   :  { %1362 = shalt.err (!%p1359_p0)
}
 0x680   :  { %s1363_s25 = scalar_lea.hbm %s1538_s3, 128 }
 0x681   :  { %p1364_p1 = scmp.ne.s32.totalorder %s1538_s3, %s1363_s25  ;;  %p1367_p2 = scmp.lt.u32.totalorder %s1363_s25, %s1538_s3 }
 0x683   :  { %p1369_p3 = pnand %p1367_p2, %p1364_p1 }
 0x685   :  { %1372 = shalt.err (!%p1369_p3)
}
 0x686   :  { %718 = dma.vmem_to_hbm [thread:$0]  %s716_s21, 128, %s1538_s3, [#allocation4]  }
 0x687   :  { %1377 = dma.done.wait [#allocation4], 128  }
 0x688   :  { %1378 = vsyncadd [#allocation4], 4294967168 }
 0x689   :  { %722 = vsyncpa [#allocation3], 1 }
 0x68a   :  { %723 = vsyncpa [#allocation6], 1 }
 0x68b   :  { %724 = vsyncpa [#allocation4], 1 }

</bundles_post_ra>
